<compile_context>
chip_gen: v7x
topology: tpu7x:2x2x1
jax: 0.10.0
libtpu: 0.0.40
codegen_flags: <defaults>
</compile_context>

<pallas_src>
import jax
import jax.numpy as jnp
from jax import lax
from jax.experimental import pallas as pl
from jax.experimental.pallas import tpu as pltpu

LANE = 128      # lanes per sublane row (batch maps to lanes)
MAX_S = 1024    # max sublane rows per grid step: 2*(3+9)*1024*128*4B = 12 MiB dbl-buffered
VMEM_LIMIT_BYTES = 32 * 1024 * 1024   # explicit scoped-VMEM limit (fits v5e/v6e/v7x physical)


def rodrigues_kernel(x_ref, o_ref):
    # x_ref: (3, S, 128) -- planes are (rx, ry, rz), each a dense (S, 128) tile
    # o_ref: (9, S, 128) -- planes are the row-major 3x3 matrix entries
    rx = x_ref[0]
    ry = x_ref[1]
    rz = x_ref[2]

    sumsq = 1e-5 + rx * rx + ry * ry + rz * rz
    inv_t = lax.rsqrt(sumsq)                     # 1/theta via EUP
    # One Newton refinement step: matches sqrt+divide reference to ~1 ULP and is
    # free in the HBM-bound regime.
    inv_t = inv_t * (1.5 - 0.5 * sumsq * inv_t * inv_t)
    theta = sumsq * inv_t                        # theta = sumsq * rsqrt(sumsq) = sqrt(sumsq)

    rx = rx * inv_t
    ry = ry * inv_t
    rz = rz * inv_t

    c = jnp.cos(theta)
    s = jnp.sin(theta)
    omc = 1.0 - c

    # Pre-scale by (1-c) once; reuse for off-diagonals AND diagonals.
    rxo = rx * omc
    ryo = ry * omc
    rzo = rz * omc

    xy = rxo * ry
    xz = rxo * rz
    yz = ryo * rz
    sx = rx * s
    sy = ry * s
    sz = rz * s

    # Diagonal: rx^2 + (1-rx^2)*c == c + rx^2*(1-c) == c + rx*rxo
    o_ref[0] = c + rx * rxo
    o_ref[1] = xy - sz
    o_ref[2] = xz + sy
    o_ref[3] = xy + sz
    o_ref[4] = c + ry * ryo
    o_ref[5] = yz - sx
    o_ref[6] = xz - sy
    o_ref[7] = yz + sx
    o_ref[8] = c + rz * rzo


def rodrigues(rvec, *, soa=False):
    """Rodrigues rotation.

    rvec: (N, 3) float.
    Returns:
      soa=False (default): (N, 3, 3) float32 — exact PyTorch layout.
      soa=True:            (3, 3, N) float32 — structure-of-arrays layout straight
                           from the kernel (skips the 9N-float transpose pass;
                           R[i, j, n] == out_default[n, i, j]).
    """
    n = rvec.shape[0]

    # Number of 128-lane rows needed; sublane-row tile S (multiple of 8, <= MAX_S).
    rows = pl.cdiv(n, LANE)
    s_tile = min(MAX_S, ((rows + 7) // 8) * 8)
    n_chunks = pl.cdiv(rows, s_tile)
    # Ensure >= 2 grid steps whenever splittable so v7x's 2 TensorCores both get
    # work under dimension_semantics=("parallel",). No-op on v5e/v6e.
    if n_chunks == 1 and rows > 8:
        s_tile = ((pl.cdiv(rows, 2) + 7) // 8) * 8
        n_chunks = pl.cdiv(rows, s_tile)
    rows_pad = n_chunks * s_tile
    n_pad = rows_pad * LANE

    # (N, 3) -> (3, N) -> pad -> (3, rows_pad, 128); batch along lanes,
    # components along the leading axis.  Single transpose+pad copy (XLA fuses
    # these into one fusion); padded lanes give sumsq=1e-5 -> no NaN/Inf.
    # TODO(synk): if the producer can hand rvec over already as (3, N) (or
    # (3, rows_pad, 128)), pass it straight through and skip this copy entirely.
    xt = jnp.pad(rvec.astype(jnp.float32).T, ((0, 0), (0, n_pad - n)))
    xt = xt.reshape(3, rows_pad, LANE)

    out = pl.pallas_call(
        rodrigues_kernel,
        out_shape=jax.ShapeDtypeStruct((9, rows_pad, LANE), jnp.float32),
        grid=(n_chunks,),
        in_specs=[pl.BlockSpec((3, s_tile, LANE), lambda i: (0, i, 0))],
        out_specs=pl.BlockSpec((9, s_tile, LANE), lambda i: (0, i, 0)),
        compiler_params=pltpu.CompilerParams(
            dimension_semantics=("parallel",),
            vmem_limit_bytes=VMEM_LIMIT_BYTES,
        ),
        cost_estimate=pl.CostEstimate(
            flops=40 * n_pad,
            transcendentals=3 * n_pad,
            bytes_accessed=48 * n_pad,
        ),
    )(xt)

    flat = out.reshape(9, n_pad)[:, :n]          # (9, N), plane k = R[:, k//3, k%3]
    if soa:
        # Structure-of-arrays layout: no transpose, just a slice/reshape.
        return flat.reshape(3, 3, n)
    # PyTorch layout (N, 3, 3) — costs one extra 9N-float transpose pass in XLA.
    return flat.T.reshape(n, 3, 3)


def rodrigues_ref(rvec):
    """Pure-JAX reference mirroring the PyTorch forward exactly."""
    theta = jnp.sqrt(1e-5 + jnp.sum(rvec ** 2, axis=1))
    r = rvec / theta[:, None]
    c = jnp.cos(theta)
    s = jnp.sin(theta)
    rx, ry, rz = r[:, 0], r[:, 1], r[:, 2]
    rows = jnp.stack(
        (
            rx ** 2 + (1.0 - rx ** 2) * c,
            rx * ry * (1.0 - c) - rz * s,
            rx * rz * (1.0 - c) + ry * s,
            rx * ry * (1.0 - c) + rz * s,
            ry ** 2 + (1.0 - ry ** 2) * c,
            ry * rz * (1.0 - c) - rx * s,
            rx * rz * (1.0 - c) - ry * s,
            ry * rz * (1.0 - c) + rx * s,
            rz ** 2 + (1.0 - rz ** 2) * c,
        ),
        axis=1,
    )
    return rows.reshape(-1, 3, 3)


if __name__ == "__main__":
    key = jax.random.PRNGKey(0)
    N = 8
    rvec = jax.random.normal(key, (N, 3), dtype=jnp.float32)

    ref = rodrigues_ref(rvec)

    # Default (PyTorch-compatible) layout.
    out = jax.block_until_ready(rodrigues(rvec))
    assert out.shape == (N, 3, 3), out.shape
    assert jnp.allclose(out, ref, atol=1e-5, rtol=1e-5), (
        float(jnp.max(jnp.abs(out - ref)))
    )

    # Structure-of-arrays layout (transpose-free fast path).
    out_soa = jax.block_until_ready(rodrigues(rvec, soa=True))
    assert out_soa.shape == (3, 3, N), out_soa.shape
    assert jnp.allclose(out_soa, jnp.transpose(ref, (1, 2, 0)),
                        atol=1e-5, rtol=1e-5), (
        float(jnp.max(jnp.abs(out_soa - jnp.transpose(ref, (1, 2, 0)))))
    )

    print("KERNEL_OK")
</pallas_src>

<mosaic_0001>
module attributes {stable_mosaic.version = 11 : i64} {
  func.func @rodrigues_kernel(%arg0: i32, %arg1: memref<3x8x128xf32, #tpu.memory_space<vmem>>, %arg2: memref<9x8x128xf32, #tpu.memory_space<vmem>>) attributes {dimension_semantics = [#tpu.dimension_semantics<parallel>], iteration_bounds = array<i64: 1>, scalar_prefetch = 0 : i64, scratch_operands = 0 : i64, tpu.core_type = #tpu.core_type<tc>, window_params = [{transform_indices = @transform_0, window_bounds = array<i64: 3, 8, 128>}, {transform_indices = @transform_1, window_bounds = array<i64: 9, 8, 128>}]} {
    %c0 = arith.constant 0 : index
    %c0_0 = arith.constant 0 : index
    %c0_1 = arith.constant 0 : index
    %0 = vector.load %arg1[%c0, %c0_0, %c0_1] : memref<3x8x128xf32, #tpu.memory_space<vmem>>, vector<1x8x128xf32>
    %1 = vector.shape_cast %0 : vector<1x8x128xf32> to vector<8x128xf32>
    %c1 = arith.constant 1 : index
    %c0_2 = arith.constant 0 : index
    %c0_3 = arith.constant 0 : index
    %2 = vector.load %arg1[%c1, %c0_2, %c0_3] : memref<3x8x128xf32, #tpu.memory_space<vmem>>, vector<1x8x128xf32>
    %3 = vector.shape_cast %2 : vector<1x8x128xf32> to vector<8x128xf32>
    %c2 = arith.constant 2 : index
    %c0_4 = arith.constant 0 : index
    %c0_5 = arith.constant 0 : index
    %4 = vector.load %arg1[%c2, %c0_4, %c0_5] : memref<3x8x128xf32, #tpu.memory_space<vmem>>, vector<1x8x128xf32>
    %5 = vector.shape_cast %4 : vector<1x8x128xf32> to vector<8x128xf32>
    %6 = arith.mulf %1, %1 : vector<8x128xf32>
    %cst = arith.constant 9.99999974E-6 : f32
    %7 = vector.broadcast %cst : f32 to vector<8x128xf32>
    %8 = arith.addf %7, %6 : vector<8x128xf32>
    %9 = arith.mulf %3, %3 : vector<8x128xf32>
    %10 = arith.addf %8, %9 : vector<8x128xf32>
    %11 = arith.mulf %5, %5 : vector<8x128xf32>
    %12 = arith.addf %10, %11 : vector<8x128xf32>
    %13 = math.rsqrt %12 : vector<8x128xf32>
    %cst_6 = arith.constant 5.000000e-01 : f32
    %14 = vector.broadcast %cst_6 : f32 to vector<8x128xf32>
    %15 = arith.mulf %14, %12 : vector<8x128xf32>
    %16 = arith.mulf %15, %13 : vector<8x128xf32>
    %17 = arith.mulf %16, %13 : vector<8x128xf32>
    %cst_7 = arith.constant 1.500000e+00 : f32
    %18 = vector.broadcast %cst_7 : f32 to vector<8x128xf32>
    %19 = arith.subf %18, %17 : vector<8x128xf32>
    %20 = arith.mulf %13, %19 : vector<8x128xf32>
    %21 = arith.mulf %12, %20 : vector<8x128xf32>
    %22 = arith.mulf %1, %20 : vector<8x128xf32>
    %23 = arith.mulf %3, %20 : vector<8x128xf32>
    %24 = arith.mulf %5, %20 : vector<8x128xf32>
    %25 = math.cos %21 : vector<8x128xf32>
    %26 = math.sin %21 : vector<8x128xf32>
    %cst_8 = arith.constant 1.000000e+00 : f32
    %27 = vector.broadcast %cst_8 : f32 to vector<8x128xf32>
    %28 = arith.subf %27, %25 : vector<8x128xf32>
    %29 = arith.mulf %22, %28 : vector<8x128xf32>
    %30 = arith.mulf %23, %28 : vector<8x128xf32>
    %31 = arith.mulf %24, %28 : vector<8x128xf32>
    %32 = arith.mulf %29, %23 : vector<8x128xf32>
    %33 = arith.mulf %29, %24 : vector<8x128xf32>
    %34 = arith.mulf %30, %24 : vector<8x128xf32>
    %35 = arith.mulf %22, %26 : vector<8x128xf32>
    %36 = arith.mulf %23, %26 : vector<8x128xf32>
    %37 = arith.mulf %24, %26 : vector<8x128xf32>
    %38 = arith.mulf %22, %29 : vector<8x128xf32>
    %39 = arith.addf %25, %38 : vector<8x128xf32>
    %c0_9 = arith.constant 0 : index
    %c0_10 = arith.constant 0 : index
    %c0_11 = arith.constant 0 : index
    %40 = vector.load %arg2[%c0_9, %c0_10, %c0_11] : memref<9x8x128xf32, #tpu.memory_space<vmem>>, vector<1x8x128xf32>
    %41 = vector.shape_cast %40 : vector<1x8x128xf32> to vector<8x128xf32>
    %42 = vector.shape_cast %39 : vector<8x128xf32> to vector<1x8x128xf32>
    tpu.vector_store %arg2[%c0_9, %c0_10, %c0_11], %42 {strides = array<i32>} : memref<9x8x128xf32, #tpu.memory_space<vmem>>, vector<1x8x128xf32>,
    %43 = arith.subf %32, %37 : vector<8x128xf32>
    %c1_12 = arith.constant 1 : index
    %c0_13 = arith.constant 0 : index
    %c0_14 = arith.constant 0 : index
    %44 = vector.load %arg2[%c1_12, %c0_13, %c0_14] : memref<9x8x128xf32, #tpu.memory_space<vmem>>, vector<1x8x128xf32>
    %45 = vector.shape_cast %44 : vector<1x8x128xf32> to vector<8x128xf32>
    %46 = vector.shape_cast %43 : vector<8x128xf32> to vector<1x8x128xf32>
    tpu.vector_store %arg2[%c1_12, %c0_13, %c0_14], %46 {strides = array<i32>} : memref<9x8x128xf32, #tpu.memory_space<vmem>>, vector<1x8x128xf32>,
    %47 = arith.addf %33, %36 : vector<8x128xf32>
    %c2_15 = arith.constant 2 : index
    %c0_16 = arith.constant 0 : index
    %c0_17 = arith.constant 0 : index
    %48 = vector.load %arg2[%c2_15, %c0_16, %c0_17] : memref<9x8x128xf32, #tpu.memory_space<vmem>>, vector<1x8x128xf32>
    %49 = vector.shape_cast %48 : vector<1x8x128xf32> to vector<8x128xf32>
    %50 = vector.shape_cast %47 : vector<8x128xf32> to vector<1x8x128xf32>
    tpu.vector_store %arg2[%c2_15, %c0_16, %c0_17], %50 {strides = array<i32>} : memref<9x8x128xf32, #tpu.memory_space<vmem>>, vector<1x8x128xf32>,
    %51 = arith.addf %32, %37 : vector<8x128xf32>
    %c3 = arith.constant 3 : index
    %c0_18 = arith.constant 0 : index
    %c0_19 = arith.constant 0 : index
    %52 = vector.load %arg2[%c3, %c0_18, %c0_19] : memref<9x8x128xf32, #tpu.memory_space<vmem>>, vector<1x8x128xf32>
    %53 = vector.shape_cast %52 : vector<1x8x128xf32> to vector<8x128xf32>
    %54 = vector.shape_cast %51 : vector<8x128xf32> to vector<1x8x128xf32>
    tpu.vector_store %arg2[%c3, %c0_18, %c0_19], %54 {strides = array<i32>} : memref<9x8x128xf32, #tpu.memory_space<vmem>>, vector<1x8x128xf32>,
    %55 = arith.mulf %23, %30 : vector<8x128xf32>
    %56 = arith.addf %25, %55 : vector<8x128xf32>
    %c4 = arith.constant 4 : index
    %c0_20 = arith.constant 0 : index
    %c0_21 = arith.constant 0 : index
    %57 = vector.load %arg2[%c4, %c0_20, %c0_21] : memref<9x8x128xf32, #tpu.memory_space<vmem>>, vector<1x8x128xf32>
    %58 = vector.shape_cast %57 : vector<1x8x128xf32> to vector<8x128xf32>
    %59 = vector.shape_cast %56 : vector<8x128xf32> to vector<1x8x128xf32>
    tpu.vector_store %arg2[%c4, %c0_20, %c0_21], %59 {strides = array<i32>} : memref<9x8x128xf32, #tpu.memory_space<vmem>>, vector<1x8x128xf32>,
    %60 = arith.subf %34, %35 : vector<8x128xf32>
    %c5 = arith.constant 5 : index
    %c0_22 = arith.constant 0 : index
    %c0_23 = arith.constant 0 : index
    %61 = vector.load %arg2[%c5, %c0_22, %c0_23] : memref<9x8x128xf32, #tpu.memory_space<vmem>>, vector<1x8x128xf32>
    %62 = vector.shape_cast %61 : vector<1x8x128xf32> to vector<8x128xf32>
    %63 = vector.shape_cast %60 : vector<8x128xf32> to vector<1x8x128xf32>
    tpu.vector_store %arg2[%c5, %c0_22, %c0_23], %63 {strides = array<i32>} : memref<9x8x128xf32, #tpu.memory_space<vmem>>, vector<1x8x128xf32>,
    %64 = arith.subf %33, %36 : vector<8x128xf32>
    %c6 = arith.constant 6 : index
    %c0_24 = arith.constant 0 : index
    %c0_25 = arith.constant 0 : index
    %65 = vector.load %arg2[%c6, %c0_24, %c0_25] : memref<9x8x128xf32, #tpu.memory_space<vmem>>, vector<1x8x128xf32>
    %66 = vector.shape_cast %65 : vector<1x8x128xf32> to vector<8x128xf32>
    %67 = vector.shape_cast %64 : vector<8x128xf32> to vector<1x8x128xf32>
    tpu.vector_store %arg2[%c6, %c0_24, %c0_25], %67 {strides = array<i32>} : memref<9x8x128xf32, #tpu.memory_space<vmem>>, vector<1x8x128xf32>,
    %68 = arith.addf %34, %35 : vector<8x128xf32>
    %c7 = arith.constant 7 : index
    %c0_26 = arith.constant 0 : index
    %c0_27 = arith.constant 0 : index
    %69 = vector.load %arg2[%c7, %c0_26, %c0_27] : memref<9x8x128xf32, #tpu.memory_space<vmem>>, vector<1x8x128xf32>
    %70 = vector.shape_cast %69 : vector<1x8x128xf32> to vector<8x128xf32>
    %71 = vector.shape_cast %68 : vector<8x128xf32> to vector<1x8x128xf32>
    tpu.vector_store %arg2[%c7, %c0_26, %c0_27], %71 {strides = array<i32>} : memref<9x8x128xf32, #tpu.memory_space<vmem>>, vector<1x8x128xf32>,
    %72 = arith.mulf %24, %31 : vector<8x128xf32>
    %73 = arith.addf %25, %72 : vector<8x128xf32>
    %c8 = arith.constant 8 : index
    %c0_28 = arith.constant 0 : index
    %c0_29 = arith.constant 0 : index
    %74 = vector.load %arg2[%c8, %c0_28, %c0_29] : memref<9x8x128xf32, #tpu.memory_space<vmem>>, vector<1x8x128xf32>
    %75 = vector.shape_cast %74 : vector<1x8x128xf32> to vector<8x128xf32>
    %76 = vector.shape_cast %73 : vector<8x128xf32> to vector<1x8x128xf32>
    tpu.vector_store %arg2[%c8, %c0_28, %c0_29], %76 {strides = array<i32>} : memref<9x8x128xf32, #tpu.memory_space<vmem>>, vector<1x8x128xf32>,
    return
  }
  func.func @transform_0(%arg0: i32) -> (i32, i32, i32) {
    %c0_i32 = arith.constant 0 : i32
    %c0_i32_0 = arith.constant 0 : i32
    %c0_i32_1 = arith.constant 0 : i32
    return %c0_i32, %arg0, %c0_i32_0 : i32, i32, i32
  }
  func.func @transform_1(%arg0: i32) -> (i32, i32, i32) {
    %c0_i32 = arith.constant 0 : i32
    %c0_i32_0 = arith.constant 0 : i32
    %c0_i32_1 = arith.constant 0 : i32
    return %c0_i32, %arg0, %c0_i32_0 : i32, i32, i32
  }
}

</mosaic_0001>

<bundles_post_ra>
// kernel: tpu_custom_call.1
= control target key start
LH: loop header
LB: loop body
LE: loop exit
PB: predicated region body
PF: predicated region fallthrough
CT: control target
= control target key end

     0   :  { %6 = vsyncpa [#allocation3], 0  ;;  %s472_s0 = inlined_call_operand.hbm [shape: f32[3,8,128], index: 0, kind: input, shape index: {}]   ;;  %s473_s1 = inlined_call_operand.hbm [shape: f32[9,8,128], index: 1, kind: output, shape index: {}]  }
   0x1   :  { %7 = vsyncpa [#allocation4], 0  ;;  %s383_s6 = smov [#allocation2]   ;;  %s335_s10 = scalar_lea.hbm %s472_s0, 384 }
   0x2   :  { %s13_s7 = sshll.u32 %s383_s6, 4  ;;  %p336_p0 = scmp.ne.s32.totalorder %s472_s0, %s335_s10  ;;  %s14_s7 = int_to_ptr.vmem [resolvable:$true] %s13_s7 }
   0x3   :  { %p339_p1 = scmp.lt.u32.totalorder %s335_s10, %s472_s0 }
   0x5   :  { %p341_p2 = pnand %p339_p1, %p336_p0 }
   0x7   :  { %344 = shalt.err (!%p341_p2)
}
   0x8   :  { %s345_s15 = scalar_lea.vmem %s14_s7, 384  ;;  %p350_p4 = scmp.lt.s32.totalorder %s14_s7, %s14_s7 }
   0x9   :  { %p346_p3 = scmp.ne.s32.totalorder %s14_s7, %s345_s15  ;;  %p351_p5 = scmp.lt.s32.totalorder %s345_s15, %s345_s15 }
   0xb   :  { %p352_p6 = por %p351_p5, %p350_p4 }
   0xd   :  { %p353_p7 = pnand %p352_p6, %p346_p3 }
   0xf   :  { %356 = shalt.err (!%p353_p7)
}
  0x10   :  { %s384_s16 = smov 128   ;;  %s385_s17 = smov 8  }
  0x11   :  { %19 = dma.hbm_to_vmem [thread:$0]  %s472_s0, 384, %s14_s7, [#allocation3], %s384_s16, %s384_s16, %s385_s17  }
  0x12   :  { %379 = dma.done.wait [#allocation3], 384  }
  0x13   :  { %380 = vsyncadd [#allocation3], 4294966912  ;;  %v23_v0 = vld [vmem:[#allocation2] sm:$0xff]  ;;  %v25_v1 = vld [vmem:[#allocation2 + $0x8] sm:$0xff]  ;;  %v386_v30 = vmov 683565275  }
  0x14   :  { %v27_v2 = vld [vmem:[#allocation2 + $0x10] sm:$0xff]  ;;  %v28_v3 = vmul.f32 %v23_v0, %v23_v0  ;;  %v30_v4 = vmul.f32 %v25_v1, %v25_v1  ;;  %v387_v32 = vmov 2475754826   ;;  %v388_v34 = vmov 2131351028   ;;  %s392_s0 = smov [#allocation5]  }
  0x15   :  { %v32_v6 = vmul.f32 %v27_v2, %v27_v2  ;;  %v389_v36 = vmov 2102212464   ;;  %v390_v38 = vmov 920167782   ;;  %v391_v45 = vmov 1326507024  }
  0x16   :  { %v29_v5 = vadd.f32 1e-05, %v28_v3  ;;  %s295_s20 = sshll.u32 %s392_s0, 4  ;;  %s296_s20 = int_to_ptr.vmem [resolvable:$true] %s295_s20 }
  0x17   :  { %s357_s21 = scalar_lea.vmem %s296_s20, 1152  ;;  %p362_p9 = scmp.lt.s32.totalorder %s296_s20, %s296_s20 }
  0x18   :  { %v31_v7 = vadd.f32 %v30_v4, %v29_v5  ;;  %p358_p8 = scmp.ne.s32.totalorder %s296_s20, %s357_s21  ;;  %p363_p10 = scmp.lt.s32.totalorder %s357_s21, %s357_s21 }
  0x1a   :  { %v33_v8 = vadd.f32 %v32_v6, %v31_v7  ;;  %p364_p11 = por %p363_p10, %p362_p9 }
  0x1c   :  { %329 = vrsqrt.f32 %v33_v8  ;;  %v35_v9 = vmul.f32 0.5, %v33_v8  ;;  %p365_p12 = pnand %p364_p11, %p358_p8 }
  0x26   :  { %v330_v10 = vpop.eup %329 }
  0x27   :  { %v36_v11 = vmul.f32 %v330_v10, %v35_v9 }
  0x29   :  { %v37_v12 = vmul.f32 %v330_v10, %v36_v11 }
  0x2b   :  { %v38_v13 = vsub.f32 1.5, %v37_v12 }
  0x2d   :  { %v39_v14 = vmul.f32 %v330_v10, %v38_v13 }
  0x2f   :  { %v418_v15 = vmul.f32 %v39_v14, %v33_v8  ;;  %v420_v16 = vmul.f32 %v39_v14, %v23_v0  ;;  %v422_v17 = vmul.f32 %v39_v14, %v25_v1  ;;  %v424_v18 = vmul.f32 %v39_v14, %v27_v2 }
  0x31   :  { %v47_v19 = vand.u32 2139095040, %v418_v15  ;;  %v44_v21 = vand.u32 2147483647, %v418_v15  ;;  %vm46_vm7 = vcmp.lt.s32.totalorder %v418_v15, 0  ;;  %vm136_vm15 = vweird.f32 %v418_v15 }
  0x33   :  { %v48_v20 = vshrl.u32 %v47_v19, 23  ;;  %v51_v24 = vand.u32 8388607, %v44_v21  ;;  %vm45_vm8 = vcmp.le.f32.partialorder %v44_v21, 0.7853982 }
  0x35   :  { %v307_v22 = vadd.s32 4294967169, %v48_v20  ;;  %v52_v27 = vor.u32 8388608, %v51_v24 }
  0x37   :  { %v54_v23 = vadd.s32 1, %v307_v22  ;;  %v92_v47 = vshll.u32 %v52_v27, 8 }
  0x39   :  { %vm55_vm0 = vcmp.gt.s32.totalorder %v54_v23, 0 }
  0x3a   :  { %v56_v25 = vsel %vm55_vm0, %v54_v23, 0 }
  0x3b   :  { %v58_v26 = vand.u32 31, %v56_v25  ;;  %v57_v28 = vshrl.u32 %v56_v25, 5 }
  0x3d   :  { %v59_v29 = vsub.s32 32, %v58_v26  ;;  %v61_v31 = vshll.u32 %v386_v30, %v58_v26  ;;  %v64_v33 = vshll.u32 %v387_v32, %v58_v26  ;;  %v67_v35 = vshll.u32 %v388_v34, %v58_v26 }
  0x3e   :  { %v70_v37 = vshll.u32 %v389_v36, %v58_v26  ;;  %v73_v39 = vshll.u32 %v390_v38, %v58_v26  ;;  %vm76_vm1 = vcmp.lt.s32.totalorder %v57_v28, 1  ;;  %vm79_vm2 = vcmp.lt.s32.totalorder %v57_v28, 4 }
  0x3f   :  { %v60_v40 = vshrl.u32 %v386_v30, %v59_v29  ;;  %v62_v41 = vshrl.u32 %v387_v32, %v59_v29  ;;  %v65_v42 = vshrl.u32 %v388_v34, %v59_v29  ;;  %v68_v43 = vshrl.u32 %v389_v36, %v59_v29 }
  0x40   :  { %v71_v44 = vshrl.u32 %v390_v38, %v59_v29  ;;  %v74_v46 = vshrl.u32 %v391_v45, %v59_v29  ;;  %vm77_vm3 = vcmp.lt.s32.totalorder %v57_v28, 2  ;;  %vm78_vm4 = vcmp.lt.s32.totalorder %v57_v28, 3 }
  0x41   :  { %v63_v48 = vor.u32 %v62_v41, %v61_v31  ;;  %v66_v49 = vor.u32 %v65_v42, %v64_v33  ;;  %v69_v50 = vor.u32 %v68_v43, %v67_v35 }
  0x42   :  { %v72_v51 = vor.u32 %v71_v44, %v70_v37  ;;  %v75_v52 = vor.u32 %v74_v46, %v73_v39 }
  0x43   :  { %v80_v53 = vsel %vm76_vm1, %v60_v40, %v63_v48  ;;  %v81_v54 = vsel %vm79_vm2, %v69_v50, 2102212464  ;;  %v84_v55 = vsel %vm76_vm1, %v63_v48, %v66_v49  ;;  %v88_v56 = vsel %vm76_vm1, %v66_v49, %v69_v50 }
  0x44   :  { %v82_v57 = vsel %vm78_vm4, %v66_v49, %v81_v54  ;;  %v85_v58 = vsel %vm79_vm2, %v72_v51, 920167782  ;;  %v89_v59 = vsel %vm79_vm2, %v75_v52, 1326507024 }
  0x45   :  { %v86_v60 = vsel %vm78_vm4, %v69_v50, %v85_v58  ;;  %v90_v61 = vsel %vm78_vm4, %v72_v51, %v89_v59  ;;  %v83_v62 = vsel %vm77_vm3, %v80_v53, %v82_v57 }
  0x46   :  { %v87_v63 = vsel %vm77_vm3, %v84_v55, %v86_v60  ;;  %v91_v0 = vsel %vm77_vm3, %v88_v56, %v90_v61  ;;  %v99_v5 = vmul.u32 %v92_v47, %v83_v62 }
  0x47   :  { %v430_v1 = vmul.u32.u64.low %v92_v47, %v91_v0  ;;  %v431_v2 = vmul.u32.u64.high %v92_v47, %v91_v0, %v430_v1  ;;  %v433_v3 = vmul.u32.u64.low %v92_v47, %v87_v63  ;;  %v434_v4 = vmul.u32.u64.high %v92_v47, %v87_v63, %v433_v3 }
  0x49   :  { %vm101_vm5 = vc.u32 %v431_v2, %v433_v3  ;;  %v102_v6 = vadd.s32 1, %v434_v4  ;;  %v100_v22 = vadd.s32 %v433_v3, %v431_v2 }
  0x4b   :  { %v103_v7 = vsel %vm101_vm5, %v102_v6, %v434_v4 }
  0x4c   :  { %v104_v8 = vadd.s32 %v103_v7, %v99_v5 }
  0x4e   :  { %v105_v9 = vadd.s32 536870912, %v104_v8 }
  0x50   :  { %v106_v10 = vshrl.u32 %v105_v9, 30 }
  0x52   :  { %v107_v11 = vshll.u32 %v106_v10, 30  ;;  %v130_v35 = vsub.s32 4, %v106_v10 }
  0x54   :  { %v108_v12 = vsub.s32 %v104_v8, %v107_v11  ;;  %v131_v38 = vsel %vm46_vm7, %v130_v35, %v106_v10 }
  0x55   :  { %v133_v40 = vsel %vm45_vm8, 0, %v131_v38 }
  0x56   :  { %v110_v13 = vsub.s32 0, %v108_v12  ;;  %v240_v41 = vadd.s32 3, %v133_v40  ;;  %v137_v42 = vand.u32 3, %v133_v40 }
  0x58   :  { %v308_v14 = vmin.u32 %v110_v13, %v108_v12  ;;  %v241_v43 = vand.u32 3, %v240_v41  ;;  %vm142_vm9 = vcmp.eq.s32.totalorder %v137_v42, 2  ;;  %vm139_vm11 = vcmp.eq.s32.totalorder %v137_v42, 0 }
  0x59   :  { %vm138_vm13 = vcmp.lt.s32.totalorder %v137_v42, 2 }
  0x5a   :  { %v112_v19 = vclz %v308_v14  ;;  %vm246_vm10 = vcmp.eq.s32.totalorder %v241_v43, 2  ;;  %vm243_vm12 = vcmp.eq.s32.totalorder %v241_v43, 0  ;;  %vm242_vm14 = vcmp.lt.s32.totalorder %v241_v43, 2 }
  0x5c   :  { %v309_v20 = vadd.s32 4294967294, %v112_v19 }
  0x5e   :  { %vm310_vm6 = vcmp.lt.s32.totalorder %v309_v20, 0 }
  0x5f   :  { %v115_v23 = vsel %vm310_vm6, 0, %v309_v20 }
  0x60   :  { %v116_v24 = vsub.s32 32, %v115_v23  ;;  %v117_v25 = vshll.u32 %v108_v12, %v115_v23  ;;  %v120_v26 = vsub.s32 4294967266, %v115_v23 }
  0x62   :  { %v118_v27 = vshrl.u32 %v100_v22, %v116_v24  ;;  %v121_v28 = vadd.s32 127, %v120_v26 }
  0x64   :  { %v119_v29 = vor.u32 %v118_v27, %v117_v25  ;;  %v122_v30 = vshll.u32 %v121_v28, 23 }
  0x66   :  { %v123_v31 = vor.u32 4788187, %v122_v30  ;;  %v126_v32 = vcvt.s32.f32 %v119_v29 }
  0x68   :  { %v124_v33 = vand.u32 2147483647, %v123_v31 }
  0x6a   :  { %v127_v34 = vmul.f32 %v126_v32, %v124_v33 }
  0x6c   :  { %v128_v36 = vxor.u32 2147483648, %v127_v34 }
  0x6e   :  { %v129_v37 = vsel %vm46_vm7, %v128_v36, %v127_v34 }
  0x6f   :  { %v132_v39 = vsel %vm45_vm8, %v418_v15, %v129_v37 }
  0x70   :  { %331 = vcosq.f32 %v132_v39 }
  0x71   :  { %333 = vsinq.f32 %v132_v39 }
  0x7a   :  { %v332_v44 = vpop.eup %331 }
  0x7b   :  { %v334_v45 = vpop.eup %333  ;;  %v143_v46 = vxor.u32 2147483648, %v332_v44 }
  0x7c   :  { %v140_v21 = vxor.u32 2147483648, %v334_v45 }
  0x7d   :  { %v144_v47 = vsel %vm142_vm9, %v143_v46, %v334_v45  ;;  %v248_v48 = vsel %vm246_vm10, %v143_v46, %v334_v45 }
  0x7e   :  { %v141_v49 = vsel %vm139_vm11, %v332_v44, %v140_v21  ;;  %v245_v50 = vsel %vm243_vm12, %v332_v44, %v140_v21 }
  0x7f   :  { %v145_v51 = vsel %vm138_vm13, %v141_v49, %v144_v47  ;;  %v249_v52 = vsel %vm242_vm14, %v245_v50, %v248_v48 }
  0x80   :  { %v146_v53 = vsel %vm136_vm15, nan, %v145_v51  ;;  %v250_v54 = vsel %vm136_vm15, nan, %v249_v52 }
  0x81   :  { %v251_v55 = vsub.f32 1.0, %v146_v53  ;;  %v260_v56 = vmul.f32 %v250_v54, %v424_v18  ;;  %v259_v57 = vmul.f32 %v250_v54, %v422_v17  ;;  %v258_v58 = vmul.f32 %v250_v54, %v420_v16 }
  0x83   :  { %v252_v59 = vmul.f32 %v251_v55, %v420_v16  ;;  %v253_v60 = vmul.f32 %v251_v55, %v422_v17  ;;  %v254_v15 = vmul.f32 %v251_v55, %v424_v18 }
  0x85   :  { %v261_v61 = vmul.f32 %v252_v59, %v420_v16  ;;  %v255_v62 = vmul.f32 %v252_v59, %v422_v17  ;;  %v256_v63 = vmul.f32 %v252_v59, %v424_v18  ;;  %v273_v0 = vmul.f32 %v253_v60, %v422_v17 }
  0x86   :  { %v257_v1 = vmul.f32 %v253_v60, %v424_v18  ;;  %v286_v2 = vmul.f32 %v254_v15, %v424_v18 }
  0x87   :  { %v262_v3 = vadd.f32 %v261_v61, %v146_v53  ;;  %v264_v4 = vsub.f32 %v255_v62, %v260_v56  ;;  %v267_v5 = vadd.f32 %v259_v57, %v256_v63  ;;  %v270_v6 = vadd.f32 %v260_v56, %v255_v62 }
  0x88   :  { %v274_v7 = vadd.f32 %v273_v0, %v146_v53  ;;  %v277_v8 = vsub.f32 %v257_v1, %v258_v58  ;;  %v280_v9 = vsub.f32 %v256_v63, %v259_v57  ;;  %v283_v16 = vadd.f32 %v258_v58, %v257_v1 }
  0x89   :  { %263 = vst [vmem:[#allocation5] sm:$0xff] %v262_v3  ;;  %266 = vst [vmem:[#allocation5 + $0x8] sm:$0xff] %v264_v4  ;;  %v287_v10 = vadd.f32 %v286_v2, %v146_v53 }
  0x8a   :  { %269 = vst [vmem:[#allocation5 + $0x10] sm:$0xff] %v267_v5  ;;  %272 = vst [vmem:[#allocation5 + $0x18] sm:$0xff] %v270_v6 }
  0x8b   :  { %276 = vst [vmem:[#allocation5 + $0x20] sm:$0xff] %v274_v7  ;;  %279 = vst [vmem:[#allocation5 + $0x28] sm:$0xff] %v277_v8 }
  0x8c   :  { %282 = vst [vmem:[#allocation5 + $0x30] sm:$0xff] %v280_v9  ;;  %285 = vst [vmem:[#allocation5 + $0x38] sm:$0xff] %v283_v16 }
  0x8d   :  { %289 = vst [vmem:[#allocation5 + $0x40] sm:$0xff] %v287_v10 }
  0x8e   :  { %368 = shalt.err (!%p365_p12)
}
  0x8f   :  { %s369_s24 = scalar_lea.hbm %s473_s1, 1152 }
  0x90   :  { %p370_p13 = scmp.ne.s32.totalorder %s473_s1, %s369_s24  ;;  %p373_p0 = scmp.lt.u32.totalorder %s369_s24, %s473_s1 }
  0x92   :  { %p375_p1 = pnand %p373_p0, %p370_p13 }
  0x94   :  { %378 = shalt.err (!%p375_p1)
}
  0x95   :  { %301 = dma.vmem_to_hbm [thread:$0]  %s296_s20, 1152, %s473_s1, [#allocation4], %s384_s16, %s384_s16, %s385_s17  }
  0x96   :  { %381 = dma.done.wait [#allocation4], 1152  }
  0x97   :  { %382 = vsyncadd [#allocation4], 4294966144 }
  0x98   :  { %305 = vsyncpa [#allocation3], 1 }
  0x99   :  { %306 = vsyncpa [#allocation4], 1 }

</bundles_post_ra>
